<compile_context>
chip_gen: v7x
topology: tpu7x:2x2x1
jax: 0.10.0
libtpu: 0.0.40
codegen_flags: <defaults>
</compile_context>

<pallas_src>
import functools

import jax
import jax.numpy as jnp
from jax import lax
from jax.experimental import pallas as pl
from jax.experimental.pallas import tpu as pltpu


def _conv_attention_kernel(x_ref, m_ref, w1_ref, w2_ref, w3_ref, o_ref, *, H, W):
    """Fused 3-layer 3x3 conv-attention for one batch image.

    x_ref : VMEM f32[1, C, H*W]   lane-dense input activations
    m_ref : VMEM f32[9, C, H*W]   0/1 validity mask per 3x3 tap
    w*_ref: VMEM f32[3, 3, C, C]  per-tap (Cout, Cin) weight tiles
    o_ref : VMEM f32[1, 1, H*W]   sigmoid attention map (channel 0)
    """
    HW = H * W

    def shifted(act, dy, dx):
        # act[:, p] -> act[:, p + dy*W + dx], zeroed outside the image.
        off = dy * W + dx
        if off == 0:
            return act
        rolled = pltpu.roll(act, (-off) % HW, axis=1)      # XLU lane rotate
        return rolled * m_ref[(dy + 1) * 3 + (dx + 1)]     # kill wrapped taps

    def conv3x3(act, w_ref):
        # act: (Cin, HW); w_ref[ky, kx]: (Cout, Cin)  ->  (Cout, HW)
        parts = []
        for dy in (-1, 0, 1):
            part = None
            for dx in (-1, 0, 1):
                slab = shifted(act, dy, dx)
                t = jnp.dot(w_ref[dy + 1, dx + 1], slab,
                            preferred_element_type=jnp.float32)   # MXU
                part = t if part is None else part + t
            parts.append(part)
        # Three independent partial accumulators -> short final add tree.
        return parts[0] + (parts[1] + parts[2])

    def lrelu(h):
        return jnp.where(h >= 0, h, 0.2 * h)

    act = x_ref[0]                                  # (C, HW)
    act = lrelu(conv3x3(act, w1_ref))
    act = lrelu(conv3x3(act, w2_ref))
    h = conv3x3(act, w3_ref)[0:1, :]                # only out-channel 0 is real
    o_ref[0] = 1.0 / (1.0 + jnp.exp(-h))            # sigmoid (exp on EUP)


@jax.jit
def conv_attention(x, w1, w2, w3):
    """ConvAttention.forward in NCHW: conv->lrelu->conv->lrelu->conv->sigmoid."""
    N, C, H, W = x.shape
    HW = H * W
    xf = x.reshape(N, C, HW).astype(jnp.float32)

    # 0/1 masks marking which of the 9 taps fall inside the image per pixel.
    ii = jnp.arange(HW, dtype=jnp.int32)
    r, c = ii // W, ii % W
    masks = []
    for dy in (-1, 0, 1):
        for dx in (-1, 0, 1):
            valid = ((r + dy >= 0) & (r + dy < H) &
                     (c + dx >= 0) & (c + dx < W))
            masks.append(jnp.broadcast_to(
                valid.astype(jnp.float32)[None, :], (C, HW)))
    tap_mask = jnp.stack(masks, axis=0)             # (9, C, HW)

    def prep(w):
        # (Cout, Cin, 3, 3) -> zero-pad Cout up to C -> (3, 3, C, C)
        cout = w.shape[0]
        wf = w.astype(jnp.float32)
        if cout < C:
            wf = jnp.pad(wf, ((0, C - cout), (0, 0), (0, 0), (0, 0)))
        return jnp.transpose(wf, (2, 3, 0, 1))

    kernel = functools.partial(_conv_attention_kernel, H=H, W=W)
    out = pl.pallas_call(
        kernel,
        out_shape=jax.ShapeDtypeStruct((N, 1, HW), jnp.float32),
        grid=(N,),
        in_specs=[
            pl.BlockSpec((1, C, HW), lambda n: (n, 0, 0)),        # x (per image)
            pl.BlockSpec((9, C, HW), lambda n: (0, 0, 0)),        # tap masks
            pl.BlockSpec((3, 3, C, C), lambda n: (0, 0, 0, 0)),   # w1
            pl.BlockSpec((3, 3, C, C), lambda n: (0, 0, 0, 0)),   # w2
            pl.BlockSpec((3, 3, C, C), lambda n: (0, 0, 0, 0)),   # w3 (padded)
        ],
        out_specs=pl.BlockSpec((1, 1, HW), lambda n: (n, 0, 0)),
        compiler_params=pltpu.CompilerParams(
            dimension_semantics=("parallel",)),
    )(xf, tap_mask, prep(w1), prep(w2), prep(w3))
    return out.reshape(N, 1, H, W)


def _ref_conv_attention(x, w1, w2, w3):
    """Pure-JAX reference (same semantics as the PyTorch module)."""
    def conv(v, w):
        return lax.conv_general_dilated(
            v, w, window_strides=(1, 1), padding="SAME",
            dimension_numbers=("NCHW", "OIHW", "NCHW"),
            precision=lax.Precision.HIGHEST)
    h = conv(x, w1)
    h = jnp.where(h >= 0, h, 0.2 * h)
    h = conv(h, w2)
    h = jnp.where(h >= 0, h, 0.2 * h)
    return jax.nn.sigmoid(conv(h, w3))


if __name__ == "__main__":
    key = jax.random.PRNGKey(0)
    N, C, H, W = 2, 4, 16, 16  # small shapes consistent with the module

    kx, k1, k2, k3 = jax.random.split(key, 4)
    x = jax.random.normal(kx, (N, C, H, W), dtype=jnp.float32)
    # Deterministic parameter init (kaiming-like scale for 3x3 convs).
    scale = (2.0 / (C * 9)) ** 0.5
    w1 = scale * jax.random.normal(k1, (C, C, 3, 3), dtype=jnp.float32)
    w2 = scale * jax.random.normal(k2, (C, C, 3, 3), dtype=jnp.float32)
    w3 = scale * jax.random.normal(k3, (1, C, 3, 3), dtype=jnp.float32)

    out = jax.block_until_ready(conv_attention(x, w1, w2, w3))
    ref = _ref_conv_attention(x, w1, w2, w3)

    assert out.shape == (N, 1, H, W), out.shape
    assert jnp.allclose(out, ref, atol=2e-4, rtol=2e-4), (
        float(jnp.max(jnp.abs(out - ref))))

    print("KERNEL_OK")
</pallas_src>

<mosaic_0001>
module attributes {stable_mosaic.version = 11 : i64} {
  func.func @_conv_attention_kernel(%arg0: i32, %arg1: memref<1x4x256xf32, #tpu.memory_space<vmem>>, %arg2: memref<9x4x256xf32, #tpu.memory_space<vmem>>, %arg3: memref<3x3x4x4xf32, #tpu.memory_space<vmem>>, %arg4: memref<3x3x4x4xf32, #tpu.memory_space<vmem>>, %arg5: memref<3x3x4x4xf32, #tpu.memory_space<vmem>>, %arg6: memref<1x1x256xf32, #tpu.memory_space<vmem>>) attributes {dimension_semantics = [#tpu.dimension_semantics<parallel>], iteration_bounds = array<i64: 2>, scalar_prefetch = 0 : i64, scratch_operands = 0 : i64, tpu.core_type = #tpu.core_type<tc>, window_params = [{transform_indices = @transform_0, window_bounds = array<i64: 1, 4, 256>}, {pipeline_mode = #tpu.pipeline_mode<synchronous>, transform_indices = @transform_1, window_bounds = array<i64: 9, 4, 256>}, {pipeline_mode = #tpu.pipeline_mode<synchronous>, transform_indices = @transform_2, window_bounds = array<i64: 3, 3, 4, 4>}, {pipeline_mode = #tpu.pipeline_mode<synchronous>, transform_indices = @transform_3, window_bounds = array<i64: 3, 3, 4, 4>}, {pipeline_mode = #tpu.pipeline_mode<synchronous>, transform_indices = @transform_4, window_bounds = array<i64: 3, 3, 4, 4>}, {transform_indices = @transform_5, window_bounds = array<i64: 1, 1, 256>}]} {
    %c0 = arith.constant 0 : index
    %c0_0 = arith.constant 0 : index
    %c0_1 = arith.constant 0 : index
    %0 = vector.load %arg1[%c0, %c0_0, %c0_1] : memref<1x4x256xf32, #tpu.memory_space<vmem>>, vector<1x4x256xf32>
    %1 = vector.shape_cast %0 : vector<1x4x256xf32> to vector<4x256xf32>
    %c17_i32 = arith.constant 17 : i32
    %2 = tpu.dynamic_rotate %1 by %c17_i32 dim 1 : vector<4x256xf32>, i32 -> vector<4x256xf32>
    %c0_2 = arith.constant 0 : index
    %c0_3 = arith.constant 0 : index
    %c0_4 = arith.constant 0 : index
    %3 = vector.load %arg2[%c0_2, %c0_3, %c0_4] : memref<9x4x256xf32, #tpu.memory_space<vmem>>, vector<1x4x256xf32>
    %4 = vector.shape_cast %3 : vector<1x4x256xf32> to vector<4x256xf32>
    %5 = arith.mulf %2, %4 : vector<4x256xf32>
    %c0_5 = arith.constant 0 : index
    %c0_6 = arith.constant 0 : index
    %c0_7 = arith.constant 0 : index
    %c0_8 = arith.constant 0 : index
    %6 = vector.load %arg3[%c0_5, %c0_6, %c0_7, %c0_8] : memref<3x3x4x4xf32, #tpu.memory_space<vmem>>, vector<1x1x4x4xf32>
    %7 = vector.shape_cast %6 : vector<1x1x4x4xf32> to vector<4x4xf32>
    %cst = arith.constant dense<0.000000e+00> : vector<4x256xf32>
    %8 = tpu.matmul %7, %5, %cst {dimension_numbers = #tpu.dot_dimension_numbers<[1], [0], [0], [1], [0, 0, 1, 1], [], []>} : vector<4x4xf32>, vector<4x256xf32>, vector<4x256xf32> -> vector<4x256xf32>
    %c16_i32 = arith.constant 16 : i32
    %9 = tpu.dynamic_rotate %1 by %c16_i32 dim 1 : vector<4x256xf32>, i32 -> vector<4x256xf32>
    %c1 = arith.constant 1 : index
    %c0_9 = arith.constant 0 : index
    %c0_10 = arith.constant 0 : index
    %10 = vector.load %arg2[%c1, %c0_9, %c0_10] : memref<9x4x256xf32, #tpu.memory_space<vmem>>, vector<1x4x256xf32>
    %11 = vector.shape_cast %10 : vector<1x4x256xf32> to vector<4x256xf32>
    %12 = arith.mulf %9, %11 : vector<4x256xf32>
    %c0_11 = arith.constant 0 : index
    %c1_12 = arith.constant 1 : index
    %c0_13 = arith.constant 0 : index
    %c0_14 = arith.constant 0 : index
    %13 = vector.load %arg3[%c0_11, %c1_12, %c0_13, %c0_14] : memref<3x3x4x4xf32, #tpu.memory_space<vmem>>, vector<1x1x4x4xf32>
    %14 = vector.shape_cast %13 : vector<1x1x4x4xf32> to vector<4x4xf32>
    %cst_15 = arith.constant dense<0.000000e+00> : vector<4x256xf32>
    %15 = tpu.matmul %14, %12, %cst_15 {dimension_numbers = #tpu.dot_dimension_numbers<[1], [0], [0], [1], [0, 0, 1, 1], [], []>} : vector<4x4xf32>, vector<4x256xf32>, vector<4x256xf32> -> vector<4x256xf32>
    %16 = arith.addf %8, %15 : vector<4x256xf32>
    %c15_i32 = arith.constant 15 : i32
    %17 = tpu.dynamic_rotate %1 by %c15_i32 dim 1 : vector<4x256xf32>, i32 -> vector<4x256xf32>
    %c2 = arith.constant 2 : index
    %c0_16 = arith.constant 0 : index
    %c0_17 = arith.constant 0 : index
    %18 = vector.load %arg2[%c2, %c0_16, %c0_17] : memref<9x4x256xf32, #tpu.memory_space<vmem>>, vector<1x4x256xf32>
    %19 = vector.shape_cast %18 : vector<1x4x256xf32> to vector<4x256xf32>
    %20 = arith.mulf %17, %19 : vector<4x256xf32>
    %c0_18 = arith.constant 0 : index
    %c2_19 = arith.constant 2 : index
    %c0_20 = arith.constant 0 : index
    %c0_21 = arith.constant 0 : index
    %21 = vector.load %arg3[%c0_18, %c2_19, %c0_20, %c0_21] : memref<3x3x4x4xf32, #tpu.memory_space<vmem>>, vector<1x1x4x4xf32>
    %22 = vector.shape_cast %21 : vector<1x1x4x4xf32> to vector<4x4xf32>
    %cst_22 = arith.constant dense<0.000000e+00> : vector<4x256xf32>
    %23 = tpu.matmul %22, %20, %cst_22 {dimension_numbers = #tpu.dot_dimension_numbers<[1], [0], [0], [1], [0, 0, 1, 1], [], []>} : vector<4x4xf32>, vector<4x256xf32>, vector<4x256xf32> -> vector<4x256xf32>
    %24 = arith.addf %16, %23 : vector<4x256xf32>
    %c1_i32 = arith.constant 1 : i32
    %25 = tpu.dynamic_rotate %1 by %c1_i32 dim 1 : vector<4x256xf32>, i32 -> vector<4x256xf32>
    %c3 = arith.constant 3 : index
    %c0_23 = arith.constant 0 : index
    %c0_24 = arith.constant 0 : index
    %26 = vector.load %arg2[%c3, %c0_23, %c0_24] : memref<9x4x256xf32, #tpu.memory_space<vmem>>, vector<1x4x256xf32>
    %27 = vector.shape_cast %26 : vector<1x4x256xf32> to vector<4x256xf32>
    %28 = arith.mulf %25, %27 : vector<4x256xf32>
    %c1_25 = arith.constant 1 : index
    %c0_26 = arith.constant 0 : index
    %c0_27 = arith.constant 0 : index
    %c0_28 = arith.constant 0 : index
    %29 = vector.load %arg3[%c1_25, %c0_26, %c0_27, %c0_28] : memref<3x3x4x4xf32, #tpu.memory_space<vmem>>, vector<1x1x4x4xf32>
    %30 = vector.shape_cast %29 : vector<1x1x4x4xf32> to vector<4x4xf32>
    %cst_29 = arith.constant dense<0.000000e+00> : vector<4x256xf32>
    %31 = tpu.matmul %30, %28, %cst_29 {dimension_numbers = #tpu.dot_dimension_numbers<[1], [0], [0], [1], [0, 0, 1, 1], [], []>} : vector<4x4xf32>, vector<4x256xf32>, vector<4x256xf32> -> vector<4x256xf32>
    %c1_30 = arith.constant 1 : index
    %c1_31 = arith.constant 1 : index
    %c0_32 = arith.constant 0 : index
    %c0_33 = arith.constant 0 : index
    %32 = vector.load %arg3[%c1_30, %c1_31, %c0_32, %c0_33] : memref<3x3x4x4xf32, #tpu.memory_space<vmem>>, vector<1x1x4x4xf32>
    %33 = vector.shape_cast %32 : vector<1x1x4x4xf32> to vector<4x4xf32>
    %cst_34 = arith.constant dense<0.000000e+00> : vector<4x256xf32>
    %34 = tpu.matmul %33, %1, %cst_34 {dimension_numbers = #tpu.dot_dimension_numbers<[1], [0], [0], [1], [0, 0, 1, 1], [], []>} : vector<4x4xf32>, vector<4x256xf32>, vector<4x256xf32> -> vector<4x256xf32>
    %35 = arith.addf %31, %34 : vector<4x256xf32>
    %c255_i32 = arith.constant 255 : i32
    %36 = tpu.dynamic_rotate %1 by %c255_i32 dim 1 : vector<4x256xf32>, i32 -> vector<4x256xf32>
    %c5 = arith.constant 5 : index
    %c0_35 = arith.constant 0 : index
    %c0_36 = arith.constant 0 : index
    %37 = vector.load %arg2[%c5, %c0_35, %c0_36] : memref<9x4x256xf32, #tpu.memory_space<vmem>>, vector<1x4x256xf32>
    %38 = vector.shape_cast %37 : vector<1x4x256xf32> to vector<4x256xf32>
    %39 = arith.mulf %36, %38 : vector<4x256xf32>
    %c1_37 = arith.constant 1 : index
    %c2_38 = arith.constant 2 : index
    %c0_39 = arith.constant 0 : index
    %c0_40 = arith.constant 0 : index
    %40 = vector.load %arg3[%c1_37, %c2_38, %c0_39, %c0_40] : memref<3x3x4x4xf32, #tpu.memory_space<vmem>>, vector<1x1x4x4xf32>
    %41 = vector.shape_cast %40 : vector<1x1x4x4xf32> to vector<4x4xf32>
    %cst_41 = arith.constant dense<0.000000e+00> : vector<4x256xf32>
    %42 = tpu.matmul %41, %39, %cst_41 {dimension_numbers = #tpu.dot_dimension_numbers<[1], [0], [0], [1], [0, 0, 1, 1], [], []>} : vector<4x4xf32>, vector<4x256xf32>, vector<4x256xf32> -> vector<4x256xf32>
    %43 = arith.addf %35, %42 : vector<4x256xf32>
    %c241_i32 = arith.constant 241 : i32
    %44 = tpu.dynamic_rotate %1 by %c241_i32 dim 1 : vector<4x256xf32>, i32 -> vector<4x256xf32>
    %c6 = arith.constant 6 : index
    %c0_42 = arith.constant 0 : index
    %c0_43 = arith.constant 0 : index
    %45 = vector.load %arg2[%c6, %c0_42, %c0_43] : memref<9x4x256xf32, #tpu.memory_space<vmem>>, vector<1x4x256xf32>
    %46 = vector.shape_cast %45 : vector<1x4x256xf32> to vector<4x256xf32>
    %47 = arith.mulf %44, %46 : vector<4x256xf32>
    %c2_44 = arith.constant 2 : index
    %c0_45 = arith.constant 0 : index
    %c0_46 = arith.constant 0 : index
    %c0_47 = arith.constant 0 : index
    %48 = vector.load %arg3[%c2_44, %c0_45, %c0_46, %c0_47] : memref<3x3x4x4xf32, #tpu.memory_space<vmem>>, vector<1x1x4x4xf32>
    %49 = vector.shape_cast %48 : vector<1x1x4x4xf32> to vector<4x4xf32>
    %cst_48 = arith.constant dense<0.000000e+00> : vector<4x256xf32>
    %50 = tpu.matmul %49, %47, %cst_48 {dimension_numbers = #tpu.dot_dimension_numbers<[1], [0], [0], [1], [0, 0, 1, 1], [], []>} : vector<4x4xf32>, vector<4x256xf32>, vector<4x256xf32> -> vector<4x256xf32>
    %c240_i32 = arith.constant 240 : i32
    %51 = tpu.dynamic_rotate %1 by %c240_i32 dim 1 : vector<4x256xf32>, i32 -> vector<4x256xf32>
    %c7 = arith.constant 7 : index
    %c0_49 = arith.constant 0 : index
    %c0_50 = arith.constant 0 : index
    %52 = vector.load %arg2[%c7, %c0_49, %c0_50] : memref<9x4x256xf32, #tpu.memory_space<vmem>>, vector<1x4x256xf32>
    %53 = vector.shape_cast %52 : vector<1x4x256xf32> to vector<4x256xf32>
    %54 = arith.mulf %51, %53 : vector<4x256xf32>
    %c2_51 = arith.constant 2 : index
    %c1_52 = arith.constant 1 : index
    %c0_53 = arith.constant 0 : index
    %c0_54 = arith.constant 0 : index
    %55 = vector.load %arg3[%c2_51, %c1_52, %c0_53, %c0_54] : memref<3x3x4x4xf32, #tpu.memory_space<vmem>>, vector<1x1x4x4xf32>
    %56 = vector.shape_cast %55 : vector<1x1x4x4xf32> to vector<4x4xf32>
    %cst_55 = arith.constant dense<0.000000e+00> : vector<4x256xf32>
    %57 = tpu.matmul %56, %54, %cst_55 {dimension_numbers = #tpu.dot_dimension_numbers<[1], [0], [0], [1], [0, 0, 1, 1], [], []>} : vector<4x4xf32>, vector<4x256xf32>, vector<4x256xf32> -> vector<4x256xf32>
    %58 = arith.addf %50, %57 : vector<4x256xf32>
    %c239_i32 = arith.constant 239 : i32
    %59 = tpu.dynamic_rotate %1 by %c239_i32 dim 1 : vector<4x256xf32>, i32 -> vector<4x256xf32>
    %c8 = arith.constant 8 : index
    %c0_56 = arith.constant 0 : index
    %c0_57 = arith.constant 0 : index
    %60 = vector.load %arg2[%c8, %c0_56, %c0_57] : memref<9x4x256xf32, #tpu.memory_space<vmem>>, vector<1x4x256xf32>
    %61 = vector.shape_cast %60 : vector<1x4x256xf32> to vector<4x256xf32>
    %62 = arith.mulf %59, %61 : vector<4x256xf32>
    %c2_58 = arith.constant 2 : index
    %c2_59 = arith.constant 2 : index
    %c0_60 = arith.constant 0 : index
    %c0_61 = arith.constant 0 : index
    %63 = vector.load %arg3[%c2_58, %c2_59, %c0_60, %c0_61] : memref<3x3x4x4xf32, #tpu.memory_space<vmem>>, vector<1x1x4x4xf32>
    %64 = vector.shape_cast %63 : vector<1x1x4x4xf32> to vector<4x4xf32>
    %cst_62 = arith.constant dense<0.000000e+00> : vector<4x256xf32>
    %65 = tpu.matmul %64, %62, %cst_62 {dimension_numbers = #tpu.dot_dimension_numbers<[1], [0], [0], [1], [0, 0, 1, 1], [], []>} : vector<4x4xf32>, vector<4x256xf32>, vector<4x256xf32> -> vector<4x256xf32>
    %66 = arith.addf %58, %65 : vector<4x256xf32>
    %67 = arith.addf %43, %66 : vector<4x256xf32>
    %68 = arith.addf %24, %67 : vector<4x256xf32>
    %cst_63 = arith.constant 0.000000e+00 : f32
    %69 = vector.broadcast %cst_63 : f32 to vector<4x256xf32>
    %70 = arith.cmpf oge, %68, %69 : vector<4x256xf32>
    %cst_64 = arith.constant 2.000000e-01 : f32
    %71 = vector.broadcast %cst_64 : f32 to vector<4x256xf32>
    %72 = arith.mulf %71, %68 : vector<4x256xf32>
    %73 = arith.select %70, %68, %72 : vector<4x256xi1>, vector<4x256xf32>
    %c17_i32_65 = arith.constant 17 : i32
    %74 = tpu.dynamic_rotate %73 by %c17_i32_65 dim 1 : vector<4x256xf32>, i32 -> vector<4x256xf32>
    %c0_66 = arith.constant 0 : index
    %c0_67 = arith.constant 0 : index
    %c0_68 = arith.constant 0 : index
    %75 = vector.load %arg2[%c0_66, %c0_67, %c0_68] : memref<9x4x256xf32, #tpu.memory_space<vmem>>, vector<1x4x256xf32>
    %76 = vector.shape_cast %75 : vector<1x4x256xf32> to vector<4x256xf32>
    %77 = arith.mulf %74, %76 : vector<4x256xf32>
    %c0_69 = arith.constant 0 : index
    %c0_70 = arith.constant 0 : index
    %c0_71 = arith.constant 0 : index
    %c0_72 = arith.constant 0 : index
    %78 = vector.load %arg4[%c0_69, %c0_70, %c0_71, %c0_72] : memref<3x3x4x4xf32, #tpu.memory_space<vmem>>, vector<1x1x4x4xf32>
    %79 = vector.shape_cast %78 : vector<1x1x4x4xf32> to vector<4x4xf32>
    %cst_73 = arith.constant dense<0.000000e+00> : vector<4x256xf32>
    %80 = tpu.matmul %79, %77, %cst_73 {dimension_numbers = #tpu.dot_dimension_numbers<[1], [0], [0], [1], [0, 0, 1, 1], [], []>} : vector<4x4xf32>, vector<4x256xf32>, vector<4x256xf32> -> vector<4x256xf32>
    %c16_i32_74 = arith.constant 16 : i32
    %81 = tpu.dynamic_rotate %73 by %c16_i32_74 dim 1 : vector<4x256xf32>, i32 -> vector<4x256xf32>
    %c1_75 = arith.constant 1 : index
    %c0_76 = arith.constant 0 : index
    %c0_77 = arith.constant 0 : index
    %82 = vector.load %arg2[%c1_75, %c0_76, %c0_77] : memref<9x4x256xf32, #tpu.memory_space<vmem>>, vector<1x4x256xf32>
    %83 = vector.shape_cast %82 : vector<1x4x256xf32> to vector<4x256xf32>
    %84 = arith.mulf %81, %83 : vector<4x256xf32>
    %c0_78 = arith.constant 0 : index
    %c1_79 = arith.constant 1 : index
    %c0_80 = arith.constant 0 : index
    %c0_81 = arith.constant 0 : index
    %85 = vector.load %arg4[%c0_78, %c1_79, %c0_80, %c0_81] : memref<3x3x4x4xf32, #tpu.memory_space<vmem>>, vector<1x1x4x4xf32>
    %86 = vector.shape_cast %85 : vector<1x1x4x4xf32> to vector<4x4xf32>
    %cst_82 = arith.constant dense<0.000000e+00> : vector<4x256xf32>
    %87 = tpu.matmul %86, %84, %cst_82 {dimension_numbers = #tpu.dot_dimension_numbers<[1], [0], [0], [1], [0, 0, 1, 1], [], []>} : vector<4x4xf32>, vector<4x256xf32>, vector<4x256xf32> -> vector<4x256xf32>
    %88 = arith.addf %80, %87 : vector<4x256xf32>
    %c15_i32_83 = arith.constant 15 : i32
    %89 = tpu.dynamic_rotate %73 by %c15_i32_83 dim 1 : vector<4x256xf32>, i32 -> vector<4x256xf32>
    %c2_84 = arith.constant 2 : index
    %c0_85 = arith.constant 0 : index
    %c0_86 = arith.constant 0 : index
    %90 = vector.load %arg2[%c2_84, %c0_85, %c0_86] : memref<9x4x256xf32, #tpu.memory_space<vmem>>, vector<1x4x256xf32>
    %91 = vector.shape_cast %90 : vector<1x4x256xf32> to vector<4x256xf32>
    %92 = arith.mulf %89, %91 : vector<4x256xf32>
    %c0_87 = arith.constant 0 : index
    %c2_88 = arith.constant 2 : index
    %c0_89 = arith.constant 0 : index
    %c0_90 = arith.constant 0 : index
    %93 = vector.load %arg4[%c0_87, %c2_88, %c0_89, %c0_90] : memref<3x3x4x4xf32, #tpu.memory_space<vmem>>, vector<1x1x4x4xf32>
    %94 = vector.shape_cast %93 : vector<1x1x4x4xf32> to vector<4x4xf32>
    %cst_91 = arith.constant dense<0.000000e+00> : vector<4x256xf32>
    %95 = tpu.matmul %94, %92, %cst_91 {dimension_numbers = #tpu.dot_dimension_numbers<[1], [0], [0], [1], [0, 0, 1, 1], [], []>} : vector<4x4xf32>, vector<4x256xf32>, vector<4x256xf32> -> vector<4x256xf32>
    %96 = arith.addf %88, %95 : vector<4x256xf32>
    %c1_i32_92 = arith.constant 1 : i32
    %97 = tpu.dynamic_rotate %73 by %c1_i32_92 dim 1 : vector<4x256xf32>, i32 -> vector<4x256xf32>
    %c3_93 = arith.constant 3 : index
    %c0_94 = arith.constant 0 : index
    %c0_95 = arith.constant 0 : index
    %98 = vector.load %arg2[%c3_93, %c0_94, %c0_95] : memref<9x4x256xf32, #tpu.memory_space<vmem>>, vector<1x4x256xf32>
    %99 = vector.shape_cast %98 : vector<1x4x256xf32> to vector<4x256xf32>
    %100 = arith.mulf %97, %99 : vector<4x256xf32>
    %c1_96 = arith.constant 1 : index
    %c0_97 = arith.constant 0 : index
    %c0_98 = arith.constant 0 : index
    %c0_99 = arith.constant 0 : index
    %101 = vector.load %arg4[%c1_96, %c0_97, %c0_98, %c0_99] : memref<3x3x4x4xf32, #tpu.memory_space<vmem>>, vector<1x1x4x4xf32>
    %102 = vector.shape_cast %101 : vector<1x1x4x4xf32> to vector<4x4xf32>
    %cst_100 = arith.constant dense<0.000000e+00> : vector<4x256xf32>
    %103 = tpu.matmul %102, %100, %cst_100 {dimension_numbers = #tpu.dot_dimension_numbers<[1], [0], [0], [1], [0, 0, 1, 1], [], []>} : vector<4x4xf32>, vector<4x256xf32>, vector<4x256xf32> -> vector<4x256xf32>
    %c1_101 = arith.constant 1 : index
    %c1_102 = arith.constant 1 : index
    %c0_103 = arith.constant 0 : index
    %c0_104 = arith.constant 0 : index
    %104 = vector.load %arg4[%c1_101, %c1_102, %c0_103, %c0_104] : memref<3x3x4x4xf32, #tpu.memory_space<vmem>>, vector<1x1x4x4xf32>
    %105 = vector.shape_cast %104 : vector<1x1x4x4xf32> to vector<4x4xf32>
    %cst_105 = arith.constant dense<0.000000e+00> : vector<4x256xf32>
    %106 = tpu.matmul %105, %73, %cst_105 {dimension_numbers = #tpu.dot_dimension_numbers<[1], [0], [0], [1], [0, 0, 1, 1], [], []>} : vector<4x4xf32>, vector<4x256xf32>, vector<4x256xf32> -> vector<4x256xf32>
    %107 = arith.addf %103, %106 : vector<4x256xf32>
    %c255_i32_106 = arith.constant 255 : i32
    %108 = tpu.dynamic_rotate %73 by %c255_i32_106 dim 1 : vector<4x256xf32>, i32 -> vector<4x256xf32>
    %c5_107 = arith.constant 5 : index
    %c0_108 = arith.constant 0 : index
    %c0_109 = arith.constant 0 : index
    %109 = vector.load %arg2[%c5_107, %c0_108, %c0_109] : memref<9x4x256xf32, #tpu.memory_space<vmem>>, vector<1x4x256xf32>
    %110 = vector.shape_cast %109 : vector<1x4x256xf32> to vector<4x256xf32>
    %111 = arith.mulf %108, %110 : vector<4x256xf32>
    %c1_110 = arith.constant 1 : index
    %c2_111 = arith.constant 2 : index
    %c0_112 = arith.constant 0 : index
    %c0_113 = arith.constant 0 : index
    %112 = vector.load %arg4[%c1_110, %c2_111, %c0_112, %c0_113] : memref<3x3x4x4xf32, #tpu.memory_space<vmem>>, vector<1x1x4x4xf32>
    %113 = vector.shape_cast %112 : vector<1x1x4x4xf32> to vector<4x4xf32>
    %cst_114 = arith.constant dense<0.000000e+00> : vector<4x256xf32>
    %114 = tpu.matmul %113, %111, %cst_114 {dimension_numbers = #tpu.dot_dimension_numbers<[1], [0], [0], [1], [0, 0, 1, 1], [], []>} : vector<4x4xf32>, vector<4x256xf32>, vector<4x256xf32> -> vector<4x256xf32>
    %115 = arith.addf %107, %114 : vector<4x256xf32>
    %c241_i32_115 = arith.constant 241 : i32
    %116 = tpu.dynamic_rotate %73 by %c241_i32_115 dim 1 : vector<4x256xf32>, i32 -> vector<4x256xf32>
    %c6_116 = arith.constant 6 : index
    %c0_117 = arith.constant 0 : index
    %c0_118 = arith.constant 0 : index
    %117 = vector.load %arg2[%c6_116, %c0_117, %c0_118] : memref<9x4x256xf32, #tpu.memory_space<vmem>>, vector<1x4x256xf32>
    %118 = vector.shape_cast %117 : vector<1x4x256xf32> to vector<4x256xf32>
    %119 = arith.mulf %116, %118 : vector<4x256xf32>
    %c2_119 = arith.constant 2 : index
    %c0_120 = arith.constant 0 : index
    %c0_121 = arith.constant 0 : index
    %c0_122 = arith.constant 0 : index
    %120 = vector.load %arg4[%c2_119, %c0_120, %c0_121, %c0_122] : memref<3x3x4x4xf32, #tpu.memory_space<vmem>>, vector<1x1x4x4xf32>
    %121 = vector.shape_cast %120 : vector<1x1x4x4xf32> to vector<4x4xf32>
    %cst_123 = arith.constant dense<0.000000e+00> : vector<4x256xf32>
    %122 = tpu.matmul %121, %119, %cst_123 {dimension_numbers = #tpu.dot_dimension_numbers<[1], [0], [0], [1], [0, 0, 1, 1], [], []>} : vector<4x4xf32>, vector<4x256xf32>, vector<4x256xf32> -> vector<4x256xf32>
    %c240_i32_124 = arith.constant 240 : i32
    %123 = tpu.dynamic_rotate %73 by %c240_i32_124 dim 1 : vector<4x256xf32>, i32 -> vector<4x256xf32>
    %c7_125 = arith.constant 7 : index
    %c0_126 = arith.constant 0 : index
    %c0_127 = arith.constant 0 : index
    %124 = vector.load %arg2[%c7_125, %c0_126, %c0_127] : memref<9x4x256xf32, #tpu.memory_space<vmem>>, vector<1x4x256xf32>
    %125 = vector.shape_cast %124 : vector<1x4x256xf32> to vector<4x256xf32>
    %126 = arith.mulf %123, %125 : vector<4x256xf32>
    %c2_128 = arith.constant 2 : index
    %c1_129 = arith.constant 1 : index
    %c0_130 = arith.constant 0 : index
    %c0_131 = arith.constant 0 : index
    %127 = vector.load %arg4[%c2_128, %c1_129, %c0_130, %c0_131] : memref<3x3x4x4xf32, #tpu.memory_space<vmem>>, vector<1x1x4x4xf32>
    %128 = vector.shape_cast %127 : vector<1x1x4x4xf32> to vector<4x4xf32>
    %cst_132 = arith.constant dense<0.000000e+00> : vector<4x256xf32>
    %129 = tpu.matmul %128, %126, %cst_132 {dimension_numbers = #tpu.dot_dimension_numbers<[1], [0], [0], [1], [0, 0, 1, 1], [], []>} : vector<4x4xf32>, vector<4x256xf32>, vector<4x256xf32> -> vector<4x256xf32>
    %130 = arith.addf %122, %129 : vector<4x256xf32>
    %c239_i32_133 = arith.constant 239 : i32
    %131 = tpu.dynamic_rotate %73 by %c239_i32_133 dim 1 : vector<4x256xf32>, i32 -> vector<4x256xf32>
    %c8_134 = arith.constant 8 : index
    %c0_135 = arith.constant 0 : index
    %c0_136 = arith.constant 0 : index
    %132 = vector.load %arg2[%c8_134, %c0_135, %c0_136] : memref<9x4x256xf32, #tpu.memory_space<vmem>>, vector<1x4x256xf32>
    %133 = vector.shape_cast %132 : vector<1x4x256xf32> to vector<4x256xf32>
    %134 = arith.mulf %131, %133 : vector<4x256xf32>
    %c2_137 = arith.constant 2 : index
    %c2_138 = arith.constant 2 : index
    %c0_139 = arith.constant 0 : index
    %c0_140 = arith.constant 0 : index
    %135 = vector.load %arg4[%c2_137, %c2_138, %c0_139, %c0_140] : memref<3x3x4x4xf32, #tpu.memory_space<vmem>>, vector<1x1x4x4xf32>
    %136 = vector.shape_cast %135 : vector<1x1x4x4xf32> to vector<4x4xf32>
    %cst_141 = arith.constant dense<0.000000e+00> : vector<4x256xf32>
    %137 = tpu.matmul %136, %134, %cst_141 {dimension_numbers = #tpu.dot_dimension_numbers<[1], [0], [0], [1], [0, 0, 1, 1], [], []>} : vector<4x4xf32>, vector<4x256xf32>, vector<4x256xf32> -> vector<4x256xf32>
    %138 = arith.addf %130, %137 : vector<4x256xf32>
    %139 = arith.addf %115, %138 : vector<4x256xf32>
    %140 = arith.addf %96, %139 : vector<4x256xf32>
    %cst_142 = arith.constant 0.000000e+00 : f32
    %141 = vector.broadcast %cst_142 : f32 to vector<4x256xf32>
    %142 = arith.cmpf oge, %140, %141 : vector<4x256xf32>
    %cst_143 = arith.constant 2.000000e-01 : f32
    %143 = vector.broadcast %cst_143 : f32 to vector<4x256xf32>
    %144 = arith.mulf %143, %140 : vector<4x256xf32>
    %145 = arith.select %142, %140, %144 : vector<4x256xi1>, vector<4x256xf32>
    %c17_i32_144 = arith.constant 17 : i32
    %146 = tpu.dynamic_rotate %145 by %c17_i32_144 dim 1 : vector<4x256xf32>, i32 -> vector<4x256xf32>
    %c0_145 = arith.constant 0 : index
    %c0_146 = arith.constant 0 : index
    %c0_147 = arith.constant 0 : index
    %147 = vector.load %arg2[%c0_145, %c0_146, %c0_147] : memref<9x4x256xf32, #tpu.memory_space<vmem>>, vector<1x4x256xf32>
    %148 = vector.shape_cast %147 : vector<1x4x256xf32> to vector<4x256xf32>
    %149 = arith.mulf %146, %148 : vector<4x256xf32>
    %c0_148 = arith.constant 0 : index
    %c0_149 = arith.constant 0 : index
    %c0_150 = arith.constant 0 : index
    %c0_151 = arith.constant 0 : index
    %150 = vector.load %arg5[%c0_148, %c0_149, %c0_150, %c0_151] : memref<3x3x4x4xf32, #tpu.memory_space<vmem>>, vector<1x1x4x4xf32>
    %151 = vector.shape_cast %150 : vector<1x1x4x4xf32> to vector<4x4xf32>
    %cst_152 = arith.constant dense<0.000000e+00> : vector<4x256xf32>
    %152 = tpu.matmul %151, %149, %cst_152 {dimension_numbers = #tpu.dot_dimension_numbers<[1], [0], [0], [1], [0, 0, 1, 1], [], []>} : vector<4x4xf32>, vector<4x256xf32>, vector<4x256xf32> -> vector<4x256xf32>
    %c16_i32_153 = arith.constant 16 : i32
    %153 = tpu.dynamic_rotate %145 by %c16_i32_153 dim 1 : vector<4x256xf32>, i32 -> vector<4x256xf32>
    %c1_154 = arith.constant 1 : index
    %c0_155 = arith.constant 0 : index
    %c0_156 = arith.constant 0 : index
    %154 = vector.load %arg2[%c1_154, %c0_155, %c0_156] : memref<9x4x256xf32, #tpu.memory_space<vmem>>, vector<1x4x256xf32>
    %155 = vector.shape_cast %154 : vector<1x4x256xf32> to vector<4x256xf32>
    %156 = arith.mulf %153, %155 : vector<4x256xf32>
    %c0_157 = arith.constant 0 : index
    %c1_158 = arith.constant 1 : index
    %c0_159 = arith.constant 0 : index
    %c0_160 = arith.constant 0 : index
    %157 = vector.load %arg5[%c0_157, %c1_158, %c0_159, %c0_160] : memref<3x3x4x4xf32, #tpu.memory_space<vmem>>, vector<1x1x4x4xf32>
    %158 = vector.shape_cast %157 : vector<1x1x4x4xf32> to vector<4x4xf32>
    %cst_161 = arith.constant dense<0.000000e+00> : vector<4x256xf32>
    %159 = tpu.matmul %158, %156, %cst_161 {dimension_numbers = #tpu.dot_dimension_numbers<[1], [0], [0], [1], [0, 0, 1, 1], [], []>} : vector<4x4xf32>, vector<4x256xf32>, vector<4x256xf32> -> vector<4x256xf32>
    %160 = arith.addf %152, %159 : vector<4x256xf32>
    %c15_i32_162 = arith.constant 15 : i32
    %161 = tpu.dynamic_rotate %145 by %c15_i32_162 dim 1 : vector<4x256xf32>, i32 -> vector<4x256xf32>
    %c2_163 = arith.constant 2 : index
    %c0_164 = arith.constant 0 : index
    %c0_165 = arith.constant 0 : index
    %162 = vector.load %arg2[%c2_163, %c0_164, %c0_165] : memref<9x4x256xf32, #tpu.memory_space<vmem>>, vector<1x4x256xf32>
    %163 = vector.shape_cast %162 : vector<1x4x256xf32> to vector<4x256xf32>
    %164 = arith.mulf %161, %163 : vector<4x256xf32>
    %c0_166 = arith.constant 0 : index
    %c2_167 = arith.constant 2 : index
    %c0_168 = arith.constant 0 : index
    %c0_169 = arith.constant 0 : index
    %165 = vector.load %arg5[%c0_166, %c2_167, %c0_168, %c0_169] : memref<3x3x4x4xf32, #tpu.memory_space<vmem>>, vector<1x1x4x4xf32>
    %166 = vector.shape_cast %165 : vector<1x1x4x4xf32> to vector<4x4xf32>
    %cst_170 = arith.constant dense<0.000000e+00> : vector<4x256xf32>
    %167 = tpu.matmul %166, %164, %cst_170 {dimension_numbers = #tpu.dot_dimension_numbers<[1], [0], [0], [1], [0, 0, 1, 1], [], []>} : vector<4x4xf32>, vector<4x256xf32>, vector<4x256xf32> -> vector<4x256xf32>
    %168 = arith.addf %160, %167 : vector<4x256xf32>
    %c1_i32_171 = arith.constant 1 : i32
    %169 = tpu.dynamic_rotate %145 by %c1_i32_171 dim 1 : vector<4x256xf32>, i32 -> vector<4x256xf32>
    %c3_172 = arith.constant 3 : index
    %c0_173 = arith.constant 0 : index
    %c0_174 = arith.constant 0 : index
    %170 = vector.load %arg2[%c3_172, %c0_173, %c0_174] : memref<9x4x256xf32, #tpu.memory_space<vmem>>, vector<1x4x256xf32>
    %171 = vector.shape_cast %170 : vector<1x4x256xf32> to vector<4x256xf32>
    %172 = arith.mulf %169, %171 : vector<4x256xf32>
    %c1_175 = arith.constant 1 : index
    %c0_176 = arith.constant 0 : index
    %c0_177 = arith.constant 0 : index
    %c0_178 = arith.constant 0 : index
    %173 = vector.load %arg5[%c1_175, %c0_176, %c0_177, %c0_178] : memref<3x3x4x4xf32, #tpu.memory_space<vmem>>, vector<1x1x4x4xf32>
    %174 = vector.shape_cast %173 : vector<1x1x4x4xf32> to vector<4x4xf32>
    %cst_179 = arith.constant dense<0.000000e+00> : vector<4x256xf32>
    %175 = tpu.matmul %174, %172, %cst_179 {dimension_numbers = #tpu.dot_dimension_numbers<[1], [0], [0], [1], [0, 0, 1, 1], [], []>} : vector<4x4xf32>, vector<4x256xf32>, vector<4x256xf32> -> vector<4x256xf32>
    %c1_180 = arith.constant 1 : index
    %c1_181 = arith.constant 1 : index
    %c0_182 = arith.constant 0 : index
    %c0_183 = arith.constant 0 : index
    %176 = vector.load %arg5[%c1_180, %c1_181, %c0_182, %c0_183] : memref<3x3x4x4xf32, #tpu.memory_space<vmem>>, vector<1x1x4x4xf32>
    %177 = vector.shape_cast %176 : vector<1x1x4x4xf32> to vector<4x4xf32>
    %cst_184 = arith.constant dense<0.000000e+00> : vector<4x256xf32>
    %178 = tpu.matmul %177, %145, %cst_184 {dimension_numbers = #tpu.dot_dimension_numbers<[1], [0], [0], [1], [0, 0, 1, 1], [], []>} : vector<4x4xf32>, vector<4x256xf32>, vector<4x256xf32> -> vector<4x256xf32>
    %179 = arith.addf %175, %178 : vector<4x256xf32>
    %c255_i32_185 = arith.constant 255 : i32
    %180 = tpu.dynamic_rotate %145 by %c255_i32_185 dim 1 : vector<4x256xf32>, i32 -> vector<4x256xf32>
    %c5_186 = arith.constant 5 : index
    %c0_187 = arith.constant 0 : index
    %c0_188 = arith.constant 0 : index
    %181 = vector.load %arg2[%c5_186, %c0_187, %c0_188] : memref<9x4x256xf32, #tpu.memory_space<vmem>>, vector<1x4x256xf32>
    %182 = vector.shape_cast %181 : vector<1x4x256xf32> to vector<4x256xf32>
    %183 = arith.mulf %180, %182 : vector<4x256xf32>
    %c1_189 = arith.constant 1 : index
    %c2_190 = arith.constant 2 : index
    %c0_191 = arith.constant 0 : index
    %c0_192 = arith.constant 0 : index
    %184 = vector.load %arg5[%c1_189, %c2_190, %c0_191, %c0_192] : memref<3x3x4x4xf32, #tpu.memory_space<vmem>>, vector<1x1x4x4xf32>
    %185 = vector.shape_cast %184 : vector<1x1x4x4xf32> to vector<4x4xf32>
    %cst_193 = arith.constant dense<0.000000e+00> : vector<4x256xf32>
    %186 = tpu.matmul %185, %183, %cst_193 {dimension_numbers = #tpu.dot_dimension_numbers<[1], [0], [0], [1], [0, 0, 1, 1], [], []>} : vector<4x4xf32>, vector<4x256xf32>, vector<4x256xf32> -> vector<4x256xf32>
    %187 = arith.addf %179, %186 : vector<4x256xf32>
    %c241_i32_194 = arith.constant 241 : i32
    %188 = tpu.dynamic_rotate %145 by %c241_i32_194 dim 1 : vector<4x256xf32>, i32 -> vector<4x256xf32>
    %c6_195 = arith.constant 6 : index
    %c0_196 = arith.constant 0 : index
    %c0_197 = arith.constant 0 : index
    %189 = vector.load %arg2[%c6_195, %c0_196, %c0_197] : memref<9x4x256xf32, #tpu.memory_space<vmem>>, vector<1x4x256xf32>
    %190 = vector.shape_cast %189 : vector<1x4x256xf32> to vector<4x256xf32>
    %191 = arith.mulf %188, %190 : vector<4x256xf32>
    %c2_198 = arith.constant 2 : index
    %c0_199 = arith.constant 0 : index
    %c0_200 = arith.constant 0 : index
    %c0_201 = arith.constant 0 : index
    %192 = vector.load %arg5[%c2_198, %c0_199, %c0_200, %c0_201] : memref<3x3x4x4xf32, #tpu.memory_space<vmem>>, vector<1x1x4x4xf32>
    %193 = vector.shape_cast %192 : vector<1x1x4x4xf32> to vector<4x4xf32>
    %cst_202 = arith.constant dense<0.000000e+00> : vector<4x256xf32>
    %194 = tpu.matmul %193, %191, %cst_202 {dimension_numbers = #tpu.dot_dimension_numbers<[1], [0], [0], [1], [0, 0, 1, 1], [], []>} : vector<4x4xf32>, vector<4x256xf32>, vector<4x256xf32> -> vector<4x256xf32>
    %c240_i32_203 = arith.constant 240 : i32
    %195 = tpu.dynamic_rotate %145 by %c240_i32_203 dim 1 : vector<4x256xf32>, i32 -> vector<4x256xf32>
    %c7_204 = arith.constant 7 : index
    %c0_205 = arith.constant 0 : index
    %c0_206 = arith.constant 0 : index
    %196 = vector.load %arg2[%c7_204, %c0_205, %c0_206] : memref<9x4x256xf32, #tpu.memory_space<vmem>>, vector<1x4x256xf32>
    %197 = vector.shape_cast %196 : vector<1x4x256xf32> to vector<4x256xf32>
    %198 = arith.mulf %195, %197 : vector<4x256xf32>
    %c2_207 = arith.constant 2 : index
    %c1_208 = arith.constant 1 : index
    %c0_209 = arith.constant 0 : index
    %c0_210 = arith.constant 0 : index
    %199 = vector.load %arg5[%c2_207, %c1_208, %c0_209, %c0_210] : memref<3x3x4x4xf32, #tpu.memory_space<vmem>>, vector<1x1x4x4xf32>
    %200 = vector.shape_cast %199 : vector<1x1x4x4xf32> to vector<4x4xf32>
    %cst_211 = arith.constant dense<0.000000e+00> : vector<4x256xf32>
    %201 = tpu.matmul %200, %198, %cst_211 {dimension_numbers = #tpu.dot_dimension_numbers<[1], [0], [0], [1], [0, 0, 1, 1], [], []>} : vector<4x4xf32>, vector<4x256xf32>, vector<4x256xf32> -> vector<4x256xf32>
    %202 = arith.addf %194, %201 : vector<4x256xf32>
    %c239_i32_212 = arith.constant 239 : i32
    %203 = tpu.dynamic_rotate %145 by %c239_i32_212 dim 1 : vector<4x256xf32>, i32 -> vector<4x256xf32>
    %c8_213 = arith.constant 8 : index
    %c0_214 = arith.constant 0 : index
    %c0_215 = arith.constant 0 : index
    %204 = vector.load %arg2[%c8_213, %c0_214, %c0_215] : memref<9x4x256xf32, #tpu.memory_space<vmem>>, vector<1x4x256xf32>
    %205 = vector.shape_cast %204 : vector<1x4x256xf32> to vector<4x256xf32>
    %206 = arith.mulf %203, %205 : vector<4x256xf32>
    %c2_216 = arith.constant 2 : index
    %c2_217 = arith.constant 2 : index
    %c0_218 = arith.constant 0 : index
    %c0_219 = arith.constant 0 : index
    %207 = vector.load %arg5[%c2_216, %c2_217, %c0_218, %c0_219] : memref<3x3x4x4xf32, #tpu.memory_space<vmem>>, vector<1x1x4x4xf32>
    %208 = vector.shape_cast %207 : vector<1x1x4x4xf32> to vector<4x4xf32>
    %cst_220 = arith.constant dense<0.000000e+00> : vector<4x256xf32>
    %209 = tpu.matmul %208, %206, %cst_220 {dimension_numbers = #tpu.dot_dimension_numbers<[1], [0], [0], [1], [0, 0, 1, 1], [], []>} : vector<4x4xf32>, vector<4x256xf32>, vector<4x256xf32> -> vector<4x256xf32>
    %210 = arith.addf %202, %209 : vector<4x256xf32>
    %211 = arith.addf %187, %210 : vector<4x256xf32>
    %212 = arith.addf %168, %211 : vector<4x256xf32>
    %213 = vector.extract_strided_slice %212 {offsets = [0, 0], sizes = [1, 256], strides = [1, 1]} : vector<4x256xf32> to vector<1x256xf32>
    %cst_221 = arith.constant 0.000000e+00 : f32
    %214 = vector.broadcast %cst_221 : f32 to vector<1x256xf32>
    %215 = arith.subf %214, %213 : vector<1x256xf32>
    %216 = math.exp %215 : vector<1x256xf32>
    %cst_222 = arith.constant 1.000000e+00 : f32
    %217 = vector.broadcast %cst_222 : f32 to vector<1x256xf32>
    %218 = arith.addf %217, %216 : vector<1x256xf32>
    %cst_223 = arith.constant 1.000000e+00 : f32
    %219 = vector.broadcast %cst_223 : f32 to vector<1x256xf32>
    %220 = arith.divf %219, %218 : vector<1x256xf32>
    %c0_224 = arith.constant 0 : index
    %c0_225 = arith.constant 0 : index
    %c0_226 = arith.constant 0 : index
    %221 = vector.load %arg6[%c0_224, %c0_225, %c0_226] : memref<1x1x256xf32, #tpu.memory_space<vmem>>, vector<1x1x256xf32>
    %222 = vector.shape_cast %221 : vector<1x1x256xf32> to vector<1x256xf32>
    %223 = vector.shape_cast %220 : vector<1x256xf32> to vector<1x1x256xf32>
    tpu.vector_store %arg6[%c0_224, %c0_225, %c0_226], %223 {strides = array<i32>} : memref<1x1x256xf32, #tpu.memory_space<vmem>>, vector<1x1x256xf32>,
    return
  }
  func.func @transform_0(%arg0: i32) -> (i32, i32, i32) {
    %c0_i32 = arith.constant 0 : i32
    %c0_i32_0 = arith.constant 0 : i32
    %c0_i32_1 = arith.constant 0 : i32
    return %arg0, %c0_i32, %c0_i32_0 : i32, i32, i32
  }
  func.func @transform_1(%arg0: i32) -> (i32, i32, i32) {
    %c0_i32 = arith.constant 0 : i32
    %c0_i32_0 = arith.constant 0 : i32
    %c0_i32_1 = arith.constant 0 : i32
    %c0_i32_2 = arith.constant 0 : i32
    return %c0_i32, %c0_i32_0, %c0_i32_1 : i32, i32, i32
  }
  func.func @transform_2(%arg0: i32) -> (i32, i32, i32, i32) {
    %c0_i32 = arith.constant 0 : i32
    %c0_i32_0 = arith.constant 0 : i32
    %c0_i32_1 = arith.constant 0 : i32
    %c0_i32_2 = arith.constant 0 : i32
    %c0_i32_3 = arith.constant 0 : i32
    return %c0_i32, %c0_i32_0, %c0_i32_1, %c0_i32_2 : i32, i32, i32, i32
  }
  func.func @transform_3(%arg0: i32) -> (i32, i32, i32, i32) {
    %c0_i32 = arith.constant 0 : i32
    %c0_i32_0 = arith.constant 0 : i32
    %c0_i32_1 = arith.constant 0 : i32
    %c0_i32_2 = arith.constant 0 : i32
    %c0_i32_3 = arith.constant 0 : i32
    return %c0_i32, %c0_i32_0, %c0_i32_1, %c0_i32_2 : i32, i32, i32, i32
  }
  func.func @transform_4(%arg0: i32) -> (i32, i32, i32, i32) {
    %c0_i32 = arith.constant 0 : i32
    %c0_i32_0 = arith.constant 0 : i32
    %c0_i32_1 = arith.constant 0 : i32
    %c0_i32_2 = arith.constant 0 : i32
    %c0_i32_3 = arith.constant 0 : i32
    return %c0_i32, %c0_i32_0, %c0_i32_1, %c0_i32_2 : i32, i32, i32, i32
  }
  func.func @transform_5(%arg0: i32) -> (i32, i32, i32) {
    %c0_i32 = arith.constant 0 : i32
    %c0_i32_0 = arith.constant 0 : i32
    %c0_i32_1 = arith.constant 0 : i32
    return %arg0, %c0_i32, %c0_i32_0 : i32, i32, i32
  }
}

</mosaic_0001>

<bundles_post_ra>
// kernel: conv_attention.1
= control target key start
LH: loop header
LB: loop body
LE: loop exit
PB: predicated region body
PF: predicated region fallthrough
CT: control target
= control target key end

     0   :  { %s3063_s18 = smov 0   ;;  %s3574_s0 = inlined_call_operand.vmem [shape: f32[2,4,256], index: 0, kind: input, shape index: {}]   ;;  %s3575_s1 = inlined_call_operand.vmem [shape: f32[9,4,256], index: 1, kind: input, shape index: {}]   ;;  %s3576_s2 = inlined_call_operand.vmem [shape: f32[3,3,4,4], index: 2, kind: input, shape index: {}]   ;;  %s3577_s3 = inlined_call_operand.vmem [shape: f32[3,3,4,4], index: 3, kind: input, shape index: {}]   ;;  %s3578_s4 = inlined_call_operand.vmem [shape: f32[3,3,4,4], index: 4, kind: input, shape index: {}]   ;;  %s3579_s5 = inlined_call_operand.vmem [shape: f32[2,1,256], index: 5, kind: output, shape index: {}]  }
   0x1 LB: > { %s2809_s19 = sadd.s32 4294967295, %s3021_s18   ;;  %p2813_p0 = scmp.ge.s32.totalorder %s3021_s18, 1  ;;  %s3021_s18 = sphi %s3063_s18, %s15_s18  }
   0x2   : > { %p187_p1 = scmp.lt.s32.totalorder %s3021_s18, 3 }
   0x4   : > { %p188_p2 = pnand %p2813_p0, %p187_p1 }
   0x5   : > { %p214_p3 = scmp.lt.s32.totalorder (!%p188_p2), %s2809_s19, 1  ;;  %v3023_v0 = vmov (!%p188_p2), 0.0   ;;  %s3024_s24 = smov (!%p188_p2), 16   ;;  %v231_v3 = vlaneseq (!%p188_p2)  ;;  %v3123_v5 = vld [vmem:[%s3575_s1 + $0x8] sm:$0xff] (!%p188_p2)  ;;  %v3128_v6 = vld [vmem:[%s3575_s1 + $0x18] sm:$0xff] (!%p188_p2)  ;;  %vm263_vm2 = vcmask (!%p188_p2), 1043456  }
   0x6   : > { %191 = sbr.rel (%p188_p2) target bundleno = 1223 (0x4c7), region = 40  ;;  %334 = vmatprep.mubr.f32.mxu1 (!%p188_p2), %v3023_v0  ;;  %688 = vmatprep.mubr.f32.mxu0 (!%p188_p2), %v3023_v0  ;;  %s3025_s25 = smov (!%p188_p2), 1   ;;  %v3133_v9 = vld [vmem:[%s3575_s1 + $0x28] sm:$0xff] (!%p188_p2)  ;;  %v3139_v10 = vcombine.high (!%p188_p2), %v3123_v5, %v3123_v5  ;;  %v3143_v11 = vcombine.high (!%p188_p2), %v3128_v6, %v3128_v6  ;;  %v2818_v23 = vld [vmem:[%s3576_s2 + $0x4] sm:$0xf] (!%p188_p2)  ;;  %vm259_vm4 = vcmask (!%p188_p2), 31744  }
   0x7   : > { %s3026_s26 = smov (!%p188_p2), 127   ;;  %s3027_s27 = smov (!%p188_p2), 17   ;;  %v3118_v4 = vand.u32 (!%p188_p2), 127, %v231_v3  ;;  %v3148_v14 = vcombine.high (!%p188_p2), %v3133_v9, %v3133_v9  ;;  %v2831_v24 = vld [vmem:[%s3576_s2 + $0xc] sm:$0xf] (!%p188_p2)  ;;  %v3171_v25 = vld [vmem:[%s3575_s1] sm:$0xff] (!%p188_p2) }
   0x8   : > { %s3028_s28 = smov (!%p188_p2), 112   ;;  %s3029_s29 = smov (!%p188_p2), 15   ;;  %v3188_v32 = vcombine.high (!%p188_p2), %v3171_v25, %v3171_v25  ;;  %v3193_v33 = vld [vmem:[%s3575_s1 + $0x38] sm:$0xff] (!%p188_p2)  ;;  %v242_v41 = vld [vmem:[%s3576_s2] sm:$0xf] (!%p188_p2)  ;;  %v3219_v43 = vld [vmem:[%s3575_s1 + $0x10] sm:$0xff] (!%p188_p2) }
   0x9   : > { %s3030_s30 = smov (!%p188_p2), 113   ;;  %s3031_s6 = smov (!%p188_p2), 111   ;;  %vm247_vm0 = vcmp.lt.s32.totalorder (!%p188_p2), %v3118_v4, 16  ;;  %vm523_vm1 = vcmp.lt.s32.totalorder (!%p188_p2), %v3118_v4, 1  ;;  %vm699_vm3 = vcmp.lt.s32.totalorder (!%p188_p2), %v3118_v4, 127  ;;  %vm233_vm5 = vcmp.lt.s32.totalorder (!%p188_p2), %v3118_v4, 17 }
   0xa   : > { %vm813_vm6 = vcmp.lt.s32.totalorder (!%p188_p2), %v3118_v4, 112  ;;  %v3208_v40 = vcombine.high (!%p188_p2), %v3193_v33, %v3193_v33  ;;  %v2840_v42 = vld [vmem:[%s3576_s2 + $0x14] sm:$0xf] (!%p188_p2)  ;;  %vm425_vm7 = vcmp.lt.s32.totalorder (!%p188_p2), %v3118_v4, 15  ;;  %v3234_v50 = vcombine.high (!%p188_p2), %v3219_v43, %v3219_v43  ;;  %v2826_v59 = vld [vmem:[%s3576_s2 + $0x8] sm:$0xf] (!%p188_p2) }
   0xb   : > { %v3239_v51 = vld [vmem:[%s3575_s1 + $0x30] sm:$0xff] (!%p188_p2)  ;;  %vm797_vm8 = vcmp.lt.s32.totalorder (!%p188_p2), %v3118_v4, 113  ;;  %v2847_v60 = vld [vmem:[%s3576_s2 + $0x1c] sm:$0xf] (!%p188_p2)  ;;  %v3265_v61 = vld [vmem:[%s3575_s1 + $0x40] sm:$0xff] (!%p188_p2)  ;;  %vm989_vm9 = vcmp.lt.s32.totalorder (!%p188_p2), %v3118_v4, 111 }
   0xc   : > { %v3254_v58 = vcombine.high (!%p188_p2), %v3239_v51, %v3239_v51  ;;  %vm2753_vm14 = vcmp.lt.s32.totalorder (!%p188_p2), %v231_v3, 256 }
   0xd   : > { %s3581_s19 = smov (!%p214_p3, %s2809_s19), 1 }
   0xe   : > { %s2931_s20 = sshll.u32 %s3581_s19, 3  ;;  %s2816_s9 = sshll.u32 %s3581_s19, 1 }
   0xf   : > { %s218_s23 = scalar_lea.vmem %s3574_s0, %s2931_s20  ;;  %s222_s12 = scalar_lea.vmem %s3579_s5, %s2816_s9 }
  0x10   : > { %v3079_v1 = vld [vmem:[%s218_s23] sm:$0xff] }
  0x11   : > { %243 = vrot.lane.b32.xlu1 %v3079_v1, %s3024_s24  ;;  %519 = vrot.lane.b32.xlu0 %v3079_v1, %s3025_s25  ;;  %v3087_v2 = vcombine.high %v3079_v1, %v3079_v1 }
  0x15   : > { %245 = vrot.lane.b32.xlu1 %v3087_v2, %s3024_s24  ;;  %521 = vrot.lane.b32.xlu0 %v3087_v2, %s3025_s25 }
  0x19   : > { %697 = vrot.lane.b32.xlu1 %v3087_v2, %s3026_s26  ;;  %695 = vrot.lane.b32.xlu0 %v3079_v1, %s3026_s26 }
  0x1d   : > { %229 = vrot.lane.b32.xlu1 %v3087_v2, %s3027_s27  ;;  %227 = vrot.lane.b32.xlu0 %v3079_v1, %s3027_s27 }
  0x21   : > { %811 = vrot.lane.b32.xlu1 %v3087_v2, %s3028_s28  ;;  %809 = vrot.lane.b32.xlu0 %v3079_v1, %s3028_s28 }
  0x25   : > { %423 = vrot.lane.b32.xlu1 %v3087_v2, %s3029_s29  ;;  %421 = vrot.lane.b32.xlu0 %v3079_v1, %s3029_s29 }
  0x29   : > { %795 = vrot.lane.b32.xlu1 %v3087_v2, %s3030_s30  ;;  %793 = vrot.lane.b32.xlu0 %v3079_v1, %s3030_s30 }
  0x2d   : > { %987 = vrot.lane.b32.xlu1 %v3087_v2, %s3031_s6  ;;  %985 = vrot.lane.b32.xlu0 %v3079_v1, %s3031_s6 }
  0x83   : > { %v244_v7 = vpop.permute.xlu1 %243  ;;  %v520_v8 = vpop.permute.xlu0 %519 }
  0x87   : > { %v246_v12 = vpop.permute.xlu1 %245  ;;  %v522_v13 = vpop.permute.xlu0 %521 }
  0x88   : > { %v248_v15 = vsel %vm247_vm0, %v244_v7, %v246_v12  ;;  %v249_v16 = vsel %vm247_vm0, %v246_v12, %v244_v7  ;;  %v524_v17 = vsel %vm523_vm1, %v520_v8, %v522_v13  ;;  %v525_v18 = vsel %vm523_vm1, %v522_v13, %v520_v8 }
  0x89   : > { %v255_v19 = vmul.f32 %v3123_v5, %v249_v16  ;;  %v531_v20 = vmul.f32 %v3128_v6, %v525_v18  ;;  %v256_v21 = vmul.f32 %v3139_v10, %v248_v15  ;;  %v532_v22 = vmul.f32 %v3143_v11, %v524_v17 }
  0x8a   : > { %v3280_v15 = vcombine.high %v3265_v61, %v3265_v61 }
  0x8b   : > { %2819 = vmatprep.subr.msk.mxu1 %vm263_vm2, %v256_v21  ;;  %v698_v26 = vpop.permute.xlu1 %697  ;;  %2836 = vmatprep.subr.msk.mxu0 %vm263_vm2, %v532_v22  ;;  %v696_v27 = vpop.permute.xlu0 %695  ;;  %v2832_v21 = vld [vmem:[%s3576_s2 + $0x10] sm:$0xf]  ;;  %v2855_v22 = vld [vmem:[%s3576_s2 + $0x20] sm:$0xf] }
  0x8c   : > { %v700_v28 = vsel %vm699_vm3, %v696_v27, %v698_v26  ;;  %v701_v29 = vsel %vm699_vm3, %v698_v26, %v696_v27  ;;  %2820 = vmatpush1.msk.msra.mxu1 %vm263_vm2, %v255_v19  ;;  %2837 = vmatpush1.msk.msra.mxu0 %vm263_vm2, %v531_v20 }
  0x8d   : > { %v707_v30 = vmul.f32 %v3133_v9, %v700_v28  ;;  %v708_v31 = vmul.f32 %v3148_v14, %v701_v29  ;;  %2821 = vmatmul.mubr.msk.f32.vlgmr.msra.gmra.mrb[0].mxu1 %vm259_vm4, %v2818_v23  ;;  %2838 = vmatmul.mubr.msk.f32.vlgmr.msra.gmra.mrb[0].mxu0 %vm259_vm4, %v2831_v24 }
  0x8e   : > { %414 = vmatprep.mubr.f32.mxu1 %v3023_v0  ;;  %784 = vmatprep.mubr.f32.mxu0 %v3023_v0 }
  0x8f   : > { %v230_v34 = vpop.permute.xlu1 %229  ;;  %2841 = vmatprep.subr.msk.mxu0 %vm263_vm2, %v708_v31  ;;  %v228_v35 = vpop.permute.xlu0 %227 }
  0x90   : > { %v234_v36 = vsel %vm233_vm5, %v228_v35, %v230_v34  ;;  %v235_v37 = vsel %vm233_vm5, %v230_v34, %v228_v35  ;;  %2842 = vmatpush1.msk.msra.mxu0 %vm263_vm2, %v707_v30 }
  0x91   : > { %v240_v38 = vmul.f32 %v3171_v25, %v235_v37  ;;  %v241_v39 = vmul.f32 %v3188_v32, %v234_v36 }
  0x93   : > { %v812_v44 = vpop.permute.xlu1 %811  ;;  %2822 = vmatprep.subr.msk.mxu1 %vm263_vm2, %v241_v39  ;;  %v810_v45 = vpop.permute.xlu0 %809 }
  0x94   : > { %v814_v46 = vsel %vm813_vm6, %v810_v45, %v812_v44  ;;  %v815_v47 = vsel %vm813_vm6, %v812_v44, %v810_v45  ;;  %2823 = vmatpush1.msk.msra.mxu1 %vm263_vm2, %v240_v38  ;;  %v2859_v45 = vld [vmem:[%s3577_s3 + $0x4] sm:$0xf] }
  0x95   : > { %v821_v48 = vmul.f32 %v3193_v33, %v814_v46  ;;  %v822_v49 = vmul.f32 %v3208_v40, %v815_v47  ;;  %2824 = vmatmul.mubr.msk.f32.vlgmr.msra.gmra.mrb[0].mxu1 %vm259_vm4, %v242_v41  ;;  %2843 = vmatmul.mubr.msk.f32.vlgmr.msra.gmra.mrb[0].mxu0 %vm259_vm4, %v2840_v42 }
  0x96   : > { %510 = vmatprep.mubr.f32.mxu1 %v3023_v0  ;;  %898 = vmatprep.mubr.f32.mxu0 %v3023_v0 }
  0x97   : > { %v424_v52 = vpop.permute.xlu1 %423  ;;  %2848 = vmatprep.subr.msk.mxu0 %vm263_vm2, %v822_v49  ;;  %v422_v53 = vpop.permute.xlu0 %421 }
  0x98   : > { %v426_v54 = vsel %vm425_vm7, %v422_v53, %v424_v52  ;;  %v427_v55 = vsel %vm425_vm7, %v424_v52, %v422_v53  ;;  %2849 = vmatpush1.msk.msra.mxu0 %vm263_vm2, %v821_v48 }
  0x99   : > { %v433_v56 = vmul.f32 %v3219_v43, %v427_v55  ;;  %v434_v57 = vmul.f32 %v3234_v50, %v426_v54 }
  0x9b   : > { %v796_v62 = vpop.permute.xlu1 %795  ;;  %2827 = vmatprep.subr.msk.mxu1 %vm263_vm2, %v434_v57  ;;  %v794_v63 = vpop.permute.xlu0 %793 }
  0x9c   : > { %v798_v7 = vsel %vm797_vm8, %v794_v63, %v796_v62  ;;  %v799_v8 = vsel %vm797_vm8, %v796_v62, %v794_v63  ;;  %2828 = vmatpush1.msk.msra.mxu1 %vm263_vm2, %v433_v56 }
  0x9d   : > { %v805_v12 = vmul.f32 %v3239_v51, %v798_v7  ;;  %v806_v13 = vmul.f32 %v3254_v58, %v799_v8  ;;  %2829 = vmatmul.mubr.msk.f32.vlgmr.msra.gmra.mrb[0].mxu1 %vm259_vm4, %v2826_v59  ;;  %2850 = vmatmul.mubr.msk.f32.vlgmr.msra.gmra.mrb[0].mxu0 %vm259_vm4, %v2847_v60  ;;  %v1101_v59 = vld [vmem:[%s3577_s3] sm:$0xf]  ;;  %v2866_v8 = vld [vmem:[%s3577_s3 + $0x8] sm:$0xf] }
  0x9e   : > { %2833 = vmatprep.subr.msk.mxu1 %vm263_vm2, %v3087_v2  ;;  %608 = vmatprep.mubr.f32.mxu1 %v3023_v0 }
  0x9f   : > { %2851 = vmatprep.subr.msk.mxu0 %vm263_vm2, %v806_v13  ;;  %v988_v16 = vpop.permute.xlu1 %987  ;;  %v986_v17 = vpop.permute.xlu0 %985  ;;  %2834 = vmatpush1.msk.msra.mxu1 %vm263_vm2, %v3079_v1  ;;  %v2845_v1 = vld [vmem:[%s3576_s2 + $0x18] sm:$0xf] }
  0xa0   : > { %2852 = vmatpush1.msk.msra.mxu0 %vm263_vm2, %v805_v12  ;;  %v990_v18 = vsel %vm989_vm9, %v986_v17, %v988_v16  ;;  %v991_v19 = vsel %vm989_vm9, %v988_v16, %v986_v17  ;;  %978 = vmatprep.mubr.f32.mxu0 %v3023_v0 }
  0xa1   : > { %v998_v2 = vmul.f32 %v3280_v15, %v991_v19  ;;  %v997_v20 = vmul.f32 %v3265_v61, %v990_v18  ;;  %v2871_v19 = vld [vmem:[%s3577_s3 + $0x10] sm:$0xf] }
  0xa3   : > { %2856 = vmatprep.subr.msk.mxu0 %vm263_vm2, %v998_v2 }
  0xa5   : > { %2835 = vmatmul.mubr.msk.f32.vlgmr.msra.gmra.mrb[0].mxu1 %vm259_vm4, %v2832_v21  ;;  %2853 = vmatmul.mubr.msk.f32.vlgmr.msra.gmra.mrb[0].mxu0 %vm259_vm4, %v2845_v1 }
  0xa6   : > { %2857 = vmatpush1.msk.msra.mxu0 %vm263_vm2, %v997_v20  ;;  %1074 = vmatprep.mubr.f32.mxu0 %v3023_v0 }
  0xa7   : > { %1185 = vmatprep.mubr.f32.mxu1 %v3023_v0 }
  0xad   : > { %2858 = vmatmul.mubr.msk.f32.vlgmr.msra.gmra.mrb[0].mxu0 %vm259_vm4, %v2855_v22 }
  0xae   : > { %2002 = vmatprep.mubr.f32.mxu0 %v3023_v0 }
 0x178   : > { %v610_v23 = vpop.f32.mrb[0].mxu1 }
 0x179   : > { %v612_v24 = vpop.f32.mrb[1].mxu1 }
 0x180   : > { %v1076_v26 = vpop.f32.mrb[0].mxu0 }
 0x181   : > { %v2932_v27 = vadd.f32 %v1076_v26, %v610_v23  ;;  %v1078_v28 = vpop.f32.mrb[1].mxu0 }
 0x182   : > { %v2933_v29 = vadd.f32 %v1078_v28, %v612_v24  ;;  %v2870_v24 = vld [vmem:[%s3577_s3 + $0xc] sm:$0xf] }
 0x183   : > { %vm1087_vm10 = vcmp.ge.f32.partialorder %v2932_v27, 0.0  ;;  %v1089_v30 = vmul.f32 0.2, %v2932_v27 }
 0x184   : > { %vm1088_vm11 = vcmp.ge.f32.partialorder %v2933_v29, 0.0  ;;  %v1090_v31 = vmul.f32 0.2, %v2933_v29 }
 0x185   : > { %v1091_v34 = vsel %vm1087_vm10, %v2932_v27, %v1089_v30 }
 0x186   : > { %v1092_v35 = vsel %vm1088_vm11, %v2933_v29, %v1090_v31  ;;  %1102 = vrot.lane.b32.xlu0 %v1091_v34, %s3024_s24 }
 0x187   : > { %1104 = vrot.lane.b32.xlu1 %v1092_v35, %s3024_s24 }
 0x18a   : > { %1093 = vrot.lane.b32.xlu0 %v1091_v34, %s3027_s27 }
 0x18b   : > { %1095 = vrot.lane.b32.xlu1 %v1092_v35, %s3027_s27 }
 0x18e   : > { %1272 = vrot.lane.b32.xlu0 %v1091_v34, %s3029_s29 }
 0x18f   : > { %1274 = vrot.lane.b32.xlu1 %v1092_v35, %s3029_s29 }
 0x192   : > { %1364 = vrot.lane.b32.xlu0 %v1091_v34, %s3025_s25 }
 0x193   : > { %1366 = vrot.lane.b32.xlu1 %v1092_v35, %s3025_s25 }
 0x196   : > { %1536 = vrot.lane.b32.xlu0 %v1091_v34, %s3026_s26 }
 0x197   : > { %1538 = vrot.lane.b32.xlu1 %v1092_v35, %s3026_s26 }
 0x19a   : > { %1638 = vrot.lane.b32.xlu0 %v1091_v34, %s3028_s28 }
 0x19b   : > { %1640 = vrot.lane.b32.xlu1 %v1092_v35, %s3028_s28 }
 0x19e   : > { %1628 = vrot.lane.b32.xlu0 %v1091_v34, %s3030_s30 }
 0x19f   : > { %1630 = vrot.lane.b32.xlu1 %v1092_v35, %s3030_s30 }
 0x1a2   : > { %1808 = vrot.lane.b32.xlu0 %v1091_v34, %s3031_s6 }
 0x1a3   : > { %1810 = vrot.lane.b32.xlu1 %v1092_v35, %s3031_s6 }
 0x1f8   : > { %v1103_v36 = vpop.permute.xlu0 %1102 }
 0x1f9   : > { %v1105_v37 = vpop.permute.xlu1 %1104 }
 0x1fa   : > { %v1106_v38 = vsel %vm247_vm0, %v1103_v36, %v1105_v37  ;;  %v1107_v39 = vsel %vm247_vm0, %v1105_v37, %v1103_v36 }
 0x1fb   : > { %v1108_v41 = vmul.f32 %v3123_v5, %v1107_v39  ;;  %v1109_v42 = vmul.f32 %v1106_v38, %v3139_v10 }
 0x1fc   : > { %v1094_v44 = vpop.permute.xlu0 %1093 }
 0x1fd   : > { %2860 = vmatprep.subr.msk.mxu1 %vm263_vm2, %v1109_v42  ;;  %v1096_v46 = vpop.permute.xlu1 %1095  ;;  %v2883_v42 = vld [vmem:[%s3577_s3 + $0x1c] sm:$0xf] }
 0x1fe   : > { %v1097_v47 = vsel %vm233_vm5, %v1094_v44, %v1096_v46  ;;  %v1098_v48 = vsel %vm233_vm5, %v1096_v46, %v1094_v44  ;;  %2861 = vmatpush1.msk.msra.mxu1 %vm263_vm2, %v1108_v41 }
 0x1ff   : > { %v1099_v49 = vmul.f32 %v1098_v48, %v3171_v25  ;;  %v1100_v52 = vmul.f32 %v1097_v47, %v3188_v32  ;;  %2862 = vmatmul.mubr.msk.f32.vlgmr.msra.gmra.mrb[2].mxu1 %vm259_vm4, %v2859_v45  ;;  %v2882_v47 = vld [vmem:[%s3577_s3 + $0x18] sm:$0xf] }
 0x200   : > { %v1273_v53 = vpop.permute.xlu0 %1272  ;;  %1265 = vmatprep.mubr.f32.mxu1 %v3023_v0 }
 0x201   : > { %2863 = vmatprep.subr.msk.mxu1 %vm263_vm2, %v1100_v52  ;;  %v1275_v54 = vpop.permute.xlu1 %1274 }
 0x202   : > { %v1276_v55 = vsel %vm425_vm7, %v1273_v53, %v1275_v54  ;;  %2864 = vmatpush1.msk.msra.mxu1 %vm263_vm2, %v1099_v49  ;;  %v1277_v56 = vsel %vm425_vm7, %v1275_v54, %v1273_v53  ;;  %v2890_v49 = vld [vmem:[%s3577_s3 + $0x20] sm:$0xf] }
 0x203   : > { %v1279_v57 = vmul.f32 %v1276_v55, %v3234_v50  ;;  %v1278_v60 = vmul.f32 %v3219_v43, %v1277_v56 }
 0x204   : > { %v1365_v62 = vpop.permute.xlu0 %1364 }
 0x205   : > { %2867 = vmatprep.subr.msk.mxu1 %vm263_vm2, %v1279_v57  ;;  %v1367_v63 = vpop.permute.xlu1 %1366 }
 0x206   : > { %v1368_v7 = vsel %vm523_vm1, %v1365_v62, %v1367_v63  ;;  %v1369_v17 = vsel %vm523_vm1, %v1367_v63, %v1365_v62 }
 0x207   : > { %2865 = vmatmul.mubr.msk.f32.vlgmr.msra.gmra.mrb[2].mxu1 %vm259_vm4, %v1101_v59  ;;  %v1371_v12 = vmul.f32 %v1368_v7, %v3143_v11  ;;  %v1370_v2 = vmul.f32 %v3128_v6, %v1369_v17 }
 0x208   : > { %2868 = vmatpush1.msk.msra.mxu1 %vm263_vm2, %v1278_v60  ;;  %1355 = vmatprep.mubr.f32.mxu1 %v3023_v0  ;;  %v1537_v13 = vpop.permute.xlu0 %1536 }
 0x209   : > { %2872 = vmatprep.subr.msk.mxu1 %vm263_vm2, %v1092_v35  ;;  %v1539_v16 = vpop.permute.xlu1 %1538 }
 0x20a   : > { %v1541_v18 = vsel %vm699_vm3, %v1539_v16, %v1537_v13  ;;  %v1540_v22 = vsel %vm699_vm3, %v1537_v13, %v1539_v16  ;;  %v2894_v13 = vld [vmem:[%s3578_s4 + $0x4] sm:$0xf] }
 0x20b   : > { %v1543_v20 = vmul.f32 %v1541_v18, %v3148_v14  ;;  %v1542_v26 = vmul.f32 %v3133_v9, %v1540_v22 }
 0x20c   : > { %v1639_v21 = vpop.permute.xlu0 %1638 }
 0x20d   : > { %v1641_v1 = vpop.permute.xlu1 %1640 }
 0x20e   : > { %v1643_v23 = vsel %vm813_vm6, %v1641_v1, %v1639_v21  ;;  %v1642_v30 = vsel %vm813_vm6, %v1639_v21, %v1641_v1 }
 0x20f   : > { %2869 = vmatmul.mubr.msk.f32.vlgmr.msra.gmra.mrb[2].mxu1 %vm259_vm4, %v2866_v8  ;;  %v1645_v27 = vmul.f32 %v1643_v23, %v3208_v40  ;;  %v1644_v35 = vmul.f32 %v3193_v33, %v1642_v30 }
 0x210   : > { %2873 = vmatpush1.msk.msra.mxu1 %vm263_vm2, %v1091_v34  ;;  %1449 = vmatprep.mubr.f32.mxu1 %v3023_v0  ;;  %v1629_v28 = vpop.permute.xlu0 %1628  ;;  %v2878_v34 = vld [vmem:[%s3577_s3 + $0x14] sm:$0xf] }
 0x211   : > { %2875 = vmatprep.subr.msk.mxu1 %vm263_vm2, %v1371_v12  ;;  %v1631_v29 = vpop.permute.xlu1 %1630 }
 0x212   : > { %v1633_v31 = vsel %vm797_vm8, %v1631_v29, %v1629_v28  ;;  %v1632_v39 = vsel %vm797_vm8, %v1629_v28, %v1631_v29 }
 0x213   : > { %v1635_v36 = vmul.f32 %v1633_v31, %v3254_v58  ;;  %v1634_v44 = vmul.f32 %v3239_v51, %v1632_v39 }
 0x214   : > { %v1809_v37 = vpop.permute.xlu0 %1808 }
 0x215   : > { %v1811_v38 = vpop.permute.xlu1 %1810 }
 0x216   : > { %v1813_v41 = vsel %vm989_vm9, %v1811_v38, %v1809_v37  ;;  %v1812_v46 = vsel %vm989_vm9, %v1809_v37, %v1811_v38 }
 0x217   : > { %2874 = vmatmul.mubr.msk.f32.vlgmr.msra.gmra.mrb[2].mxu1 %vm259_vm4, %v2871_v19  ;;  %v1815_v45 = vmul.f32 %v1813_v41, %v3280_v15  ;;  %v1814_v48 = vmul.f32 %v3265_v61, %v1812_v46 }
 0x218   : > { %2876 = vmatpush1.msk.msra.mxu1 %vm263_vm2, %v1370_v2  ;;  %1529 = vmatprep.mubr.f32.mxu1 %v3023_v0 }
 0x219   : > { %2879 = vmatprep.subr.msk.mxu1 %vm263_vm2, %v1543_v20 }
 0x21f   : > { %2877 = vmatmul.mubr.msk.f32.vlgmr.msra.gmra.mrb[2].mxu1 %vm259_vm4, %v2870_v24  ;;  %v2901_v24 = vld [vmem:[%s3578_s4 + $0x8] sm:$0xf] }
 0x220   : > { %2880 = vmatpush1.msk.msra.mxu1 %vm263_vm2, %v1542_v26  ;;  %1619 = vmatprep.mubr.f32.mxu1 %v3023_v0 }
 0x221   : > { %2884 = vmatprep.subr.msk.mxu1 %vm263_vm2, %v1645_v27 }
 0x227   : > { %2881 = vmatmul.mubr.msk.f32.vlgmr.msra.gmra.mrb[2].mxu1 %vm259_vm4, %v2878_v34 }
 0x228   : > { %2885 = vmatpush1.msk.msra.mxu1 %vm263_vm2, %v1644_v35  ;;  %1721 = vmatprep.mubr.f32.mxu1 %v3023_v0 }
 0x229   : > { %2887 = vmatprep.subr.msk.mxu1 %vm263_vm2, %v1635_v36 }
 0x22f   : > { %2886 = vmatmul.mubr.msk.f32.vlgmr.msra.gmra.mrb[2].mxu1 %vm259_vm4, %v2883_v42 }
 0x230   : > { %2888 = vmatpush1.msk.msra.mxu1 %vm263_vm2, %v1634_v44  ;;  %1801 = vmatprep.mubr.f32.mxu1 %v3023_v0 }
 0x231   : > { %2891 = vmatprep.subr.msk.mxu1 %vm263_vm2, %v1815_v45 }
 0x237   : > { %2889 = vmatmul.mubr.msk.f32.vlgmr.msra.gmra.mrb[2].mxu1 %vm259_vm4, %v2882_v47 }
 0x238   : > { %2892 = vmatpush1.msk.msra.mxu1 %vm263_vm2, %v1814_v48  ;;  %1891 = vmatprep.mubr.f32.mxu1 %v3023_v0 }
 0x23f   : > { %2893 = vmatmul.mubr.msk.f32.vlgmr.msra.gmra.mrb[2].mxu1 %vm259_vm4, %v2890_v49 }
 0x312   : > { %v1893_v52 = vpop.f32.mrb[2].mxu1 }
 0x313   : > { %vm1904_vm12 = vcmp.ge.f32.partialorder %v1893_v52, 0.0  ;;  %v1906_v53 = vmul.f32 0.2, %v1893_v52  ;;  %v1895_v54 = vpop.f32.mrb[3].mxu1 }
 0x314   : > { %vm1905_vm13 = vcmp.ge.f32.partialorder %v1895_v54, 0.0  ;;  %v1907_v55 = vmul.f32 0.2, %v1895_v54 }
 0x315   : > { %v1908_v56 = vsel %vm1904_vm12, %v1893_v52, %v1906_v53 }
 0x316   : > { %v1909_v57 = vsel %vm1905_vm13, %v1895_v54, %v1907_v55  ;;  %1919 = vrot.lane.b32.xlu0 %v1908_v56, %s3024_s24  ;;  %v2917_v54 = vld [vmem:[%s3578_s4 + $0x18] sm:$0xf] }
 0x317   : > { %1921 = vrot.lane.b32.xlu1 %v1909_v57, %s3024_s24 }
 0x31a   : > { %1910 = vrot.lane.b32.xlu0 %v1908_v56, %s3027_s27 }
 0x31b   : > { %1912 = vrot.lane.b32.xlu1 %v1909_v57, %s3027_s27 }
 0x31e   : > { %2089 = vrot.lane.b32.xlu0 %v1908_v56, %s3029_s29 }
 0x31f   : > { %2091 = vrot.lane.b32.xlu1 %v1909_v57, %s3029_s29 }
 0x322   : > { %2181 = vrot.lane.b32.xlu0 %v1908_v56, %s3025_s25 }
 0x323   : > { %2183 = vrot.lane.b32.xlu1 %v1909_v57, %s3025_s25 }
 0x326   : > { %2353 = vrot.lane.b32.xlu0 %v1908_v56, %s3026_s26 }
 0x327   : > { %2355 = vrot.lane.b32.xlu1 %v1909_v57, %s3026_s26 }
 0x32a   : > { %2455 = vrot.lane.b32.xlu0 %v1908_v56, %s3028_s28 }
 0x32b   : > { %2457 = vrot.lane.b32.xlu1 %v1909_v57, %s3028_s28 }
 0x32e   : > { %2445 = vrot.lane.b32.xlu0 %v1908_v56, %s3030_s30 }
 0x32f   : > { %2447 = vrot.lane.b32.xlu1 %v1909_v57, %s3030_s30 }
 0x332   : > { %2625 = vrot.lane.b32.xlu0 %v1908_v56, %s3031_s6 }
 0x333   : > { %2627 = vrot.lane.b32.xlu1 %v1909_v57, %s3031_s6 }
 0x388   : > { %v1920_v59 = vpop.permute.xlu0 %1919 }
 0x389   : > { %v1922_v60 = vpop.permute.xlu1 %1921 }
 0x38a   : > { %v1923_v62 = vsel %vm247_vm0, %v1920_v59, %v1922_v60  ;;  %v1924_v63 = vsel %vm247_vm0, %v1922_v60, %v1920_v59 }
 0x38b   : > { %v1925_v7 = vmul.f32 %v3123_v5, %v1924_v63  ;;  %v1926_v8 = vmul.f32 %v1923_v62, %v3139_v10 }
 0x38c   : > { %v1911_v12 = vpop.permute.xlu0 %1910 }
 0x38d   : > { %2895 = vmatprep.subr.msk.mxu0 %vm263_vm2, %v1926_v8  ;;  %v1913_v16 = vpop.permute.xlu1 %1912 }
 0x38e   : > { %v1914_v17 = vsel %vm233_vm5, %v1911_v12, %v1913_v16  ;;  %v1915_v18 = vsel %vm233_vm5, %v1913_v16, %v1911_v12  ;;  %2896 = vmatpush1.msk.msra.mxu0 %vm263_vm2, %v1925_v7 }
 0x38f   : > { %v1916_v5 = vmul.f32 %v1915_v18, %v3171_v25  ;;  %v1917_v10 = vmul.f32 %v1914_v17, %v3188_v32  ;;  %2897 = vmatmul.mubr.msk.f32.vlgmr.msra.gmra.mrb[2].mxu0 %vm259_vm4, %v2894_v13  ;;  %v1918_v32 = vld [vmem:[%s3578_s4] sm:$0xf]  ;;  %v2740_v13 = vshrl.u32 %v231_v3, 7 }
 0x390   : > { %v2090_v19 = vpop.permute.xlu0 %2089  ;;  %2082 = vmatprep.mubr.f32.mxu0 %v3023_v0 }
 0x391   : > { %2898 = vmatprep.subr.msk.mxu0 %vm263_vm2, %v1917_v10  ;;  %v2092_v2 = vpop.permute.xlu1 %2091 }
 0x392   : > { %v2093_v20 = vsel %vm425_vm7, %v2090_v19, %v2092_v2  ;;  %2899 = vmatpush1.msk.msra.mxu0 %vm263_vm2, %v1916_v5  ;;  %v2094_v21 = vsel %vm425_vm7, %v2092_v2, %v2090_v19 }
 0x393   : > { %v2096_v25 = vmul.f32 %v2093_v20, %v3234_v50  ;;  %v2095_v1 = vmul.f32 %v3219_v43, %v2094_v21 }
 0x394   : > { %v2182_v22 = vpop.permute.xlu0 %2181 }
 0x395   : > { %2902 = vmatprep.subr.msk.mxu0 %vm263_vm2, %v2096_v25  ;;  %v2184_v23 = vpop.permute.xlu1 %2183 }
 0x396   : > { %v2185_v50 = vsel %vm523_vm1, %v2182_v22, %v2184_v23  ;;  %v2186_v28 = vsel %vm523_vm1, %v2184_v23, %v2182_v22 }
 0x397   : > { %2900 = vmatmul.mubr.msk.f32.vlgmr.msra.gmra.mrb[2].mxu0 %vm259_vm4, %v1918_v32  ;;  %v2188_v26 = vmul.f32 %v2185_v50, %v3143_v11  ;;  %v2906_v11 = vld [vmem:[%s3578_s4 + $0x10] sm:$0xf]  ;;  %v2187_v30 = vmul.f32 %v3128_v6, %v2186_v28  ;;  %v2905_v6 = vld [vmem:[%s3578_s4 + $0xc] sm:$0xf] }
 0x398   : > { %2903 = vmatpush1.msk.msra.mxu0 %vm263_vm2, %v2095_v1  ;;  %2172 = vmatprep.mubr.f32.mxu0 %v3023_v0  ;;  %v2354_v43 = vpop.permute.xlu0 %2353 }
 0x399   : > { %2907 = vmatprep.subr.msk.mxu0 %vm263_vm2, %v1909_v57  ;;  %v2356_v27 = vpop.permute.xlu1 %2355 }
 0x39a   : > { %v2358_v29 = vsel %vm699_vm3, %v2356_v27, %v2354_v43  ;;  %v2357_v36 = vsel %vm699_vm3, %v2354_v43, %v2356_v27 }
 0x39b   : > { %v2360_v31 = vmul.f32 %v2358_v29, %v3148_v14  ;;  %v2359_v14 = vmul.f32 %v3133_v9, %v2357_v36  ;;  %v2913_v9 = vld [vmem:[%s3578_s4 + $0x14] sm:$0xf] }
 0x39c   : > { %v2456_v34 = vpop.permute.xlu0 %2455 }
 0x39d   : > { %v2458_v35 = vpop.permute.xlu1 %2457 }
 0x39e   : > { %v2460_v37 = vsel %vm813_vm6, %v2458_v35, %v2456_v34  ;;  %v2459_v42 = vsel %vm813_vm6, %v2456_v34, %v2458_v35 }
 0x39f   : > { %2904 = vmatmul.mubr.msk.f32.vlgmr.msra.gmra.mrb[2].mxu0 %vm259_vm4, %v2901_v24  ;;  %v2462_v38 = vmul.f32 %v2460_v37, %v3208_v40  ;;  %v2461_v40 = vmul.f32 %v3193_v33, %v2459_v42  ;;  %v2918_v33 = vld [vmem:[%s3578_s4 + $0x1c] sm:$0xf] }
 0x3a0   : > { %2908 = vmatpush1.msk.msra.mxu0 %vm263_vm2, %v1908_v56  ;;  %2266 = vmatprep.mubr.f32.mxu0 %v3023_v0  ;;  %v2446_v39 = vpop.permute.xlu0 %2445 }
 0x3a1   : > { %2910 = vmatprep.subr.msk.mxu0 %vm263_vm2, %v2188_v26  ;;  %v2448_v41 = vpop.permute.xlu1 %2447 }
 0x3a2   : > { %v2450_v44 = vsel %vm797_vm8, %v2448_v41, %v2446_v39  ;;  %v2449_v48 = vsel %vm797_vm8, %v2446_v39, %v2448_v41 }
 0x3a3   : > { %v2452_v45 = vmul.f32 %v2450_v44, %v3254_v58  ;;  %v2451_v58 = vmul.f32 %v3239_v51, %v2449_v48  ;;  %v2925_v51 = vld [vmem:[%s3578_s4 + $0x20] sm:$0xf] }
 0x3a4   : > { %v2626_v46 = vpop.permute.xlu0 %2625 }
 0x3a5   : > { %v2628_v47 = vpop.permute.xlu1 %2627 }
 0x3a6   : > { %v2630_v49 = vsel %vm989_vm9, %v2628_v47, %v2626_v46  ;;  %v2629_v53 = vsel %vm989_vm9, %v2626_v46, %v2628_v47 }
 0x3a7   : > { %2909 = vmatmul.mubr.msk.f32.vlgmr.msra.gmra.mrb[2].mxu0 %vm259_vm4, %v2906_v11  ;;  %v2632_v52 = vmul.f32 %v2630_v49, %v3280_v15  ;;  %v2631_v55 = vmul.f32 %v3265_v61, %v2629_v53 }
 0x3a8   : > { %2911 = vmatpush1.msk.msra.mxu0 %vm263_vm2, %v2187_v30  ;;  %2346 = vmatprep.mubr.f32.mxu0 %v3023_v0 }
 0x3a9   : > { %2914 = vmatprep.subr.msk.mxu0 %vm263_vm2, %v2360_v31 }
 0x3af   : > { %2912 = vmatmul.mubr.msk.f32.vlgmr.msra.gmra.mrb[2].mxu0 %vm259_vm4, %v2905_v6 }
 0x3b0   : > { %2915 = vmatpush1.msk.msra.mxu0 %vm263_vm2, %v2359_v14  ;;  %2436 = vmatprep.mubr.f32.mxu0 %v3023_v0 }
 0x3b1   : > { %2919 = vmatprep.subr.msk.mxu0 %vm263_vm2, %v2462_v38 }
 0x3b7   : > { %2916 = vmatmul.mubr.msk.f32.vlgmr.msra.gmra.mrb[2].mxu0 %vm259_vm4, %v2913_v9 }
 0x3b8   : > { %2920 = vmatpush1.msk.msra.mxu0 %vm263_vm2, %v2461_v40  ;;  %2538 = vmatprep.mubr.f32.mxu0 %v3023_v0 }
 0x3b9   : > { %2922 = vmatprep.subr.msk.mxu0 %vm263_vm2, %v2452_v45 }
 0x3bf   : > { %2921 = vmatmul.mubr.msk.f32.vlgmr.msra.gmra.mrb[2].mxu0 %vm259_vm4, %v2918_v33 }
 0x3c0   : > { %2923 = vmatpush1.msk.msra.mxu0 %vm263_vm2, %v2451_v58  ;;  %2618 = vmatprep.mubr.f32.mxu0 %v3023_v0 }
 0x3c1   : > { %2926 = vmatprep.subr.msk.mxu0 %vm263_vm2, %v2632_v52 }
 0x3c7   : > { %2924 = vmatmul.mubr.msk.f32.vlgmr.msra.gmra.mrb[2].mxu0 %vm259_vm4, %v2917_v54 }
 0x3c8   : > { %2927 = vmatpush1.msk.msra.mxu0 %vm263_vm2, %v2631_v55  ;;  %2708 = vmatprep.mubr.f32.mxu0 %v3023_v0  ;;  %v3032_v0 = vmov 1966171168  }
 0x3c9   : > { %v2737_v8 = vunpack.c.l.s4 %v3032_v0 }
 0x3cb   : > { %v2738_v12 = vunpack.c.0.s8 %v2737_v8 }
 0x3cd   : > { %v2741_v17 = vsub.s32 %v2738_v12, %v2740_v13 }
 0x3cf   : > { %2928 = vmatmul.mubr.msk.f32.vlgmr.msra.gmra.mrb[2].mxu0 %vm259_vm4, %v2925_v51 }
 0x4a2   : > { %v2710_v4 = vpop.f32.mrb[2].mxu0 }
 0x4a3   : > { %v2721_v15 = vsub.f32 0.0, %v2710_v4  ;;  %v2712_v56 = vpop.f32.mrb[3].mxu0 }
 0x4a4   : > { %v2722_v57 = vsub.f32 0.0, %v2712_v56 }
 0x4a5   : > { %v2723_v59 = vmul.f32 1.442695, %v2721_v15 }
 0x4a6   : > { %v2725_v60 = vmul.f32 1.442695, %v2722_v57 }
 0x4a7   : > { %3007 = vpow2.f32 %v2723_v59 }
 0x4a8   : > { %3009 = vpow2.f32 %v2725_v60 }
 0x4b1   : > { %v3008_v61 = vpop.eup %3007 }
 0x4b2   : > { %v3010_v62 = vpop.eup %3009  ;;  %v2727_v63 = vadd.f32 1.0, %v3008_v61 }
 0x4b3   : > { %v2728_v7 = vadd.f32 1.0, %v3010_v62 }
 0x4b4   : > { %3011 = vrcp.f32 %v2727_v63 }
 0x4b5   : > { %3013 = vrcp.f32 %v2728_v7 }
 0x4be   : > { %v3012_v16 = vpop.eup %3011 }
 0x4bf   : > { %v3014_v18 = vpop.eup %3013 }
 0x4c0   : > { %v2735_v5 = vcombine.low %v3012_v16, %v3014_v18 }
 0x4c2   : > { %v2742_v10 = vrot.slane %v2735_v5, %v2741_v17 }
 0x4c4   : > { %v2749_v19 = vrot.slane %v2742_v10, %v2741_v17 }
 0x4c6   : > { %2755 = vst.msk [vmem:[%s222_s12] sm:$0x3] %vm2753_vm14, %v2749_v19 }
 0x4c7 PF: > { %s15_s18 = sadd.s32 1, %s3021_s18  }
 0x4c8   : > { %p12_p4 = scmp.ge.s32.totalorder %s15_s18, 4  }
 0x4ca   :  { %14 = sbr.rel (!%p12_p4) target bundleno = 1 (0x1), region = 101 }

</bundles_post_ra>
